<compile_context>
chip_gen: v6e
topology: v6e:2x2x1
jax: 0.10.0
libtpu: 0.0.40
codegen_flags: <defaults>
</compile_context>

<pallas_src>
import jax
import jax.numpy as jnp
from jax import lax
from jax.experimental import pallas as pl
from jax.experimental.pallas import tpu as pltpu


def lstm_kernel(x_ref, wih_ref, whh_ref, b_ref, wfc_ref, bfc_ref,
                out_ref, xproj_sc):
    seq_len = x_ref.shape[0]
    H = whh_ref.shape[0]

    # Hoisted input projection: one M=seq_len MXU pass instead of seq_len
    # M=1 passes inside the recurrence.  Combined bias folded in here.
    xproj_sc[...] = (jnp.dot(x_ref[...], wih_ref[...],
                             preferred_element_type=jnp.float32)
                     + b_ref[...])                              # (seq, 4H)

    # Hoist the recurrent weight load out of the (unrolled) loop body.
    whh = whh_ref[...]                                          # (H, 4H)

    def step(t, carry):
        h, c = carry                                            # (1, H) each
        gates = (xproj_sc[pl.ds(t, 1), :]
                 + jnp.dot(h, whh,
                           preferred_element_type=jnp.float32))  # (1, 4H)

        # One sigmoid over the whole gate vreg covers i, f, o; one tanh for g.
        sg = jax.nn.sigmoid(gates)
        i_g = sg[:, 0 * H:1 * H]
        f_g = sg[:, 1 * H:2 * H]
        o_g = sg[:, 3 * H:4 * H]
        g_g = jnp.tanh(gates[:, 2 * H:3 * H])

        c_new = f_g * c + i_g * g_g
        h_new = o_g * jnp.tanh(c_new)
        return h_new, c_new

    h0 = jnp.zeros((1, H), jnp.float32)
    c0 = jnp.zeros((1, H), jnp.float32)
    # Unrolled so the LLO scheduler sees the whole (short) recurrence.
    h_T, _ = lax.fori_loop(0, seq_len, step, (h0, c0), unroll=True)

    # fc head on the last hidden state.
    # TODO(synk): out_dim=8 (<128 lanes) -> one masked store; negligible for a
    #             single writeback per call, pad to 128 only if hot-looped.
    out_ref[...] = (jnp.dot(h_T, wfc_ref[...],
                            preferred_element_type=jnp.float32)
                    + bfc_ref[...])


def lstm_forward(x, w_ih, w_hh, b_ih, b_hh, w_fc, b_fc):
    """x: (seq_len, input_dim) float32. Returns (1, output_dim) float32."""
    seq_len, input_dim = x.shape
    four_h = w_ih.shape[0]
    H = four_h // 4
    out_dim = w_fc.shape[0]

    wih_t = w_ih.T                                 # (input_dim, 4H)
    whh_t = w_hh.T                                 # (H, 4H)
    b = (b_ih + b_hh).reshape(1, four_h)           # (1, 4H)
    wfc_t = w_fc.T                                 # (H, out_dim)
    bfc = b_fc.reshape(1, out_dim)                 # (1, out_dim)

    return pl.pallas_call(
        lstm_kernel,
        out_shape=jax.ShapeDtypeStruct((1, out_dim), jnp.float32),
        grid_spec=pltpu.PrefetchScalarGridSpec(
            num_scalar_prefetch=0,
            grid=(1,),                                          # single launch
            in_specs=[
                pl.BlockSpec((seq_len, input_dim), lambda i: (0, 0)),  # x
                pl.BlockSpec((input_dim, four_h), lambda i: (0, 0)),   # W_ih^T
                pl.BlockSpec((H, four_h), lambda i: (0, 0)),           # W_hh^T
                pl.BlockSpec((1, four_h), lambda i: (0, 0)),           # bias
                pl.BlockSpec((H, out_dim), lambda i: (0, 0)),          # W_fc^T
                pl.BlockSpec((1, out_dim), lambda i: (0, 0)),          # b_fc
            ],
            out_specs=pl.BlockSpec((1, out_dim), lambda i: (0, 0)),
            scratch_shapes=[
                pltpu.VMEM((seq_len, four_h), jnp.float32),   # x projection
            ],
        ),
        compiler_params=pltpu.CompilerParams(
            dimension_semantics=("arbitrary",)),
    )(x, wih_t, whh_t, b, wfc_t, bfc)


def lstm_reference(x, w_ih, w_hh, b_ih, b_hh, w_fc, b_fc):
    """Pure-JAX reference mirroring torch.nn.LSTM (gate order i,f,g,o)."""
    H = w_hh.shape[1]
    h = jnp.zeros((1, H), jnp.float32)
    c = jnp.zeros((1, H), jnp.float32)
    for t in range(x.shape[0]):
        xt = x[t:t + 1]                                       # (1, D)
        gates = xt @ w_ih.T + h @ w_hh.T + b_ih + b_hh        # (1, 4H)
        i = jax.nn.sigmoid(gates[:, 0 * H:1 * H])
        f = jax.nn.sigmoid(gates[:, 1 * H:2 * H])
        g = jnp.tanh(gates[:, 2 * H:3 * H])
        o = jax.nn.sigmoid(gates[:, 3 * H:4 * H])
        c = f * c + i * g
        h = o * jnp.tanh(c)
    return h @ w_fc.T + b_fc


if __name__ == "__main__":
    seq_len, input_dim, hidden_dim, output_dim = 8, 16, 32, 8

    key = jax.random.PRNGKey(0)
    keys = jax.random.split(key, 8)
    bound = 1.0 / jnp.sqrt(hidden_dim)

    # Deterministic synthetic parameters (same shapes as nn.LSTM / nn.Linear).
    w_ih = jax.random.uniform(keys[0], (4 * hidden_dim, input_dim),
                              jnp.float32, -bound, bound)
    w_hh = jax.random.uniform(keys[1], (4 * hidden_dim, hidden_dim),
                              jnp.float32, -bound, bound)
    b_ih = jax.random.uniform(keys[2], (4 * hidden_dim,),
                              jnp.float32, -bound, bound)
    b_hh = jax.random.uniform(keys[3], (4 * hidden_dim,),
                              jnp.float32, -bound, bound)
    w_fc = jax.random.uniform(keys[4], (output_dim, hidden_dim),
                              jnp.float32, -bound, bound)
    b_fc = jax.random.uniform(keys[5], (output_dim,),
                              jnp.float32, -bound, bound)

    # forward does input.view(len(input), 1, -1) -> natural input is
    # (seq_len, input_dim) with batch = 1.
    x = jax.random.normal(keys[6], (seq_len, input_dim), jnp.float32)

    out = lstm_forward(x, w_ih, w_hh, b_ih, b_hh, w_fc, b_fc)
    out = jax.block_until_ready(out)

    ref = lstm_reference(x, w_ih, w_hh, b_ih, b_hh, w_fc, b_fc)
    assert out.shape == (1, output_dim)
    assert jnp.allclose(out, ref, atol=1e-5, rtol=1e-5), (out, ref)

    print("KERNEL_OK")
</pallas_src>

<mosaic_0001>
module attributes {stable_mosaic.version = 11 : i64} {
  func.func @lstm_kernel(%arg0: i32, %arg1: memref<8x16xf32, #tpu.memory_space<vmem>>, %arg2: memref<16x128xf32, #tpu.memory_space<vmem>>, %arg3: memref<32x128xf32, #tpu.memory_space<vmem>>, %arg4: memref<1x128xf32, #tpu.memory_space<vmem>>, %arg5: memref<32x8xf32, #tpu.memory_space<vmem>>, %arg6: memref<1x8xf32, #tpu.memory_space<vmem>>, %arg7: memref<1x8xf32, #tpu.memory_space<vmem>>, %arg8: memref<8x128xf32, #tpu.memory_space<vmem>>) attributes {dimension_semantics = [#tpu.dimension_semantics<arbitrary>], iteration_bounds = array<i64: 1>, scalar_prefetch = 0 : i64, scratch_operands = 1 : i64, tpu.core_type = #tpu.core_type<tc>, window_params = [{pipeline_mode = #tpu.pipeline_mode<synchronous>, transform_indices = @transform_0, window_bounds = array<i64: 8, 16>}, {pipeline_mode = #tpu.pipeline_mode<synchronous>, transform_indices = @transform_1, window_bounds = array<i64: 16, 128>}, {pipeline_mode = #tpu.pipeline_mode<synchronous>, transform_indices = @transform_2, window_bounds = array<i64: 32, 128>}, {pipeline_mode = #tpu.pipeline_mode<synchronous>, transform_indices = @transform_3, window_bounds = array<i64: 1, 128>}, {pipeline_mode = #tpu.pipeline_mode<synchronous>, transform_indices = @transform_4, window_bounds = array<i64: 32, 8>}, {pipeline_mode = #tpu.pipeline_mode<synchronous>, transform_indices = @transform_5, window_bounds = array<i64: 1, 8>}, {pipeline_mode = #tpu.pipeline_mode<synchronous>, transform_indices = @transform_6, window_bounds = array<i64: 1, 8>}]} {
    %c0 = arith.constant 0 : index
    %c0_0 = arith.constant 0 : index
    %0 = vector.load %arg1[%c0, %c0_0] : memref<8x16xf32, #tpu.memory_space<vmem>>, vector<8x16xf32>
    %c0_1 = arith.constant 0 : index
    %c0_2 = arith.constant 0 : index
    %1 = vector.load %arg2[%c0_1, %c0_2] : memref<16x128xf32, #tpu.memory_space<vmem>>, vector<16x128xf32>
    %cst = arith.constant dense<0.000000e+00> : vector<8x128xf32>
    %2 = tpu.matmul %0, %1, %cst {dimension_numbers = #tpu.dot_dimension_numbers<[1], [0], [0], [1], [0, 0, 1, 1], [], []>} : vector<8x16xf32>, vector<16x128xf32>, vector<8x128xf32> -> vector<8x128xf32>
    %c0_3 = arith.constant 0 : index
    %c0_4 = arith.constant 0 : index
    %3 = vector.load %arg4[%c0_3, %c0_4] : memref<1x128xf32, #tpu.memory_space<vmem>>, vector<1x128xf32>
    %4 = vector.broadcast %3 : vector<1x128xf32> to vector<8x128xf32>
    %5 = arith.addf %2, %4 : vector<8x128xf32>
    %c0_5 = arith.constant 0 : index
    %c0_6 = arith.constant 0 : index
    %6 = vector.load %arg8[%c0_5, %c0_6] : memref<8x128xf32, #tpu.memory_space<vmem>>, vector<8x128xf32>
    tpu.vector_store %arg8[%c0_5, %c0_6], %5 {strides = array<i32>} : memref<8x128xf32, #tpu.memory_space<vmem>>, vector<8x128xf32>,
    %c0_7 = arith.constant 0 : index
    %c0_8 = arith.constant 0 : index
    %7 = vector.load %arg3[%c0_7, %c0_8] : memref<32x128xf32, #tpu.memory_space<vmem>>, vector<32x128xf32>
    %cst_9 = arith.constant 0.000000e+00 : f32
    %8 = vector.broadcast %cst_9 : f32 to vector<1x32xf32>
    %cst_10 = arith.constant 0.000000e+00 : f32
    %9 = vector.broadcast %cst_10 : f32 to vector<1x32xf32>
    %c0_i32 = arith.constant 0 : i32
    %10 = arith.index_cast %c0_i32 : i32 to index
    %c0_11 = arith.constant 0 : index
    %11 = vector.load %arg8[%10, %c0_11] : memref<8x128xf32, #tpu.memory_space<vmem>>, vector<1x128xf32>
    %cst_12 = arith.constant dense<0.000000e+00> : vector<1x128xf32>
    %12 = tpu.matmul %8, %7, %cst_12 {dimension_numbers = #tpu.dot_dimension_numbers<[1], [0], [0], [1], [0, 0, 1, 1], [], []>} : vector<1x32xf32>, vector<32x128xf32>, vector<1x128xf32> -> vector<1x128xf32>
    %13 = arith.addf %11, %12 : vector<1x128xf32>
    %14 = arith.negf %13 : vector<1x128xf32>
    %15 = math.exp %14 : vector<1x128xf32>
    %cst_13 = arith.constant 1.000000e+00 : f32
    %16 = vector.broadcast %cst_13 : f32 to vector<1x128xf32>
    %17 = arith.addf %16, %15 : vector<1x128xf32>
    %18 = arith.divf %16, %17 : vector<1x128xf32>
    %19 = vector.extract_strided_slice %18 {offsets = [0, 0], sizes = [1, 32], strides = [1, 1]} : vector<1x128xf32> to vector<1x32xf32>
    %20 = vector.extract_strided_slice %18 {offsets = [0, 32], sizes = [1, 32], strides = [1, 1]} : vector<1x128xf32> to vector<1x32xf32>
    %21 = vector.extract_strided_slice %18 {offsets = [0, 96], sizes = [1, 32], strides = [1, 1]} : vector<1x128xf32> to vector<1x32xf32>
    %22 = vector.extract_strided_slice %13 {offsets = [0, 64], sizes = [1, 32], strides = [1, 1]} : vector<1x128xf32> to vector<1x32xf32>
    %23 = math.tanh %22 : vector<1x32xf32>
    %24 = arith.mulf %20, %9 : vector<1x32xf32>
    %25 = arith.mulf %19, %23 : vector<1x32xf32>
    %26 = arith.addf %24, %25 : vector<1x32xf32>
    %27 = math.tanh %26 : vector<1x32xf32>
    %28 = arith.mulf %21, %27 : vector<1x32xf32>
    %c1_i32 = arith.constant 1 : i32
    %29 = arith.index_cast %c1_i32 : i32 to index
    %c0_14 = arith.constant 0 : index
    %30 = vector.load %arg8[%29, %c0_14] : memref<8x128xf32, #tpu.memory_space<vmem>>, vector<1x128xf32>
    %cst_15 = arith.constant dense<0.000000e+00> : vector<1x128xf32>
    %31 = tpu.matmul %28, %7, %cst_15 {dimension_numbers = #tpu.dot_dimension_numbers<[1], [0], [0], [1], [0, 0, 1, 1], [], []>} : vector<1x32xf32>, vector<32x128xf32>, vector<1x128xf32> -> vector<1x128xf32>
    %32 = arith.addf %30, %31 : vector<1x128xf32>
    %33 = arith.negf %32 : vector<1x128xf32>
    %34 = math.exp %33 : vector<1x128xf32>
    %cst_16 = arith.constant 1.000000e+00 : f32
    %35 = vector.broadcast %cst_16 : f32 to vector<1x128xf32>
    %36 = arith.addf %35, %34 : vector<1x128xf32>
    %37 = arith.divf %35, %36 : vector<1x128xf32>
    %38 = vector.extract_strided_slice %37 {offsets = [0, 0], sizes = [1, 32], strides = [1, 1]} : vector<1x128xf32> to vector<1x32xf32>
    %39 = vector.extract_strided_slice %37 {offsets = [0, 32], sizes = [1, 32], strides = [1, 1]} : vector<1x128xf32> to vector<1x32xf32>
    %40 = vector.extract_strided_slice %37 {offsets = [0, 96], sizes = [1, 32], strides = [1, 1]} : vector<1x128xf32> to vector<1x32xf32>
    %41 = vector.extract_strided_slice %32 {offsets = [0, 64], sizes = [1, 32], strides = [1, 1]} : vector<1x128xf32> to vector<1x32xf32>
    %42 = math.tanh %41 : vector<1x32xf32>
    %43 = arith.mulf %39, %26 : vector<1x32xf32>
    %44 = arith.mulf %38, %42 : vector<1x32xf32>
    %45 = arith.addf %43, %44 : vector<1x32xf32>
    %46 = math.tanh %45 : vector<1x32xf32>
    %47 = arith.mulf %40, %46 : vector<1x32xf32>
    %c2_i32 = arith.constant 2 : i32
    %48 = arith.index_cast %c2_i32 : i32 to index
    %c0_17 = arith.constant 0 : index
    %49 = vector.load %arg8[%48, %c0_17] : memref<8x128xf32, #tpu.memory_space<vmem>>, vector<1x128xf32>
    %cst_18 = arith.constant dense<0.000000e+00> : vector<1x128xf32>
    %50 = tpu.matmul %47, %7, %cst_18 {dimension_numbers = #tpu.dot_dimension_numbers<[1], [0], [0], [1], [0, 0, 1, 1], [], []>} : vector<1x32xf32>, vector<32x128xf32>, vector<1x128xf32> -> vector<1x128xf32>
    %51 = arith.addf %49, %50 : vector<1x128xf32>
    %52 = arith.negf %51 : vector<1x128xf32>
    %53 = math.exp %52 : vector<1x128xf32>
    %cst_19 = arith.constant 1.000000e+00 : f32
    %54 = vector.broadcast %cst_19 : f32 to vector<1x128xf32>
    %55 = arith.addf %54, %53 : vector<1x128xf32>
    %56 = arith.divf %54, %55 : vector<1x128xf32>
    %57 = vector.extract_strided_slice %56 {offsets = [0, 0], sizes = [1, 32], strides = [1, 1]} : vector<1x128xf32> to vector<1x32xf32>
    %58 = vector.extract_strided_slice %56 {offsets = [0, 32], sizes = [1, 32], strides = [1, 1]} : vector<1x128xf32> to vector<1x32xf32>
    %59 = vector.extract_strided_slice %56 {offsets = [0, 96], sizes = [1, 32], strides = [1, 1]} : vector<1x128xf32> to vector<1x32xf32>
    %60 = vector.extract_strided_slice %51 {offsets = [0, 64], sizes = [1, 32], strides = [1, 1]} : vector<1x128xf32> to vector<1x32xf32>
    %61 = math.tanh %60 : vector<1x32xf32>
    %62 = arith.mulf %58, %45 : vector<1x32xf32>
    %63 = arith.mulf %57, %61 : vector<1x32xf32>
    %64 = arith.addf %62, %63 : vector<1x32xf32>
    %65 = math.tanh %64 : vector<1x32xf32>
    %66 = arith.mulf %59, %65 : vector<1x32xf32>
    %c3_i32 = arith.constant 3 : i32
    %67 = arith.index_cast %c3_i32 : i32 to index
    %c0_20 = arith.constant 0 : index
    %68 = vector.load %arg8[%67, %c0_20] : memref<8x128xf32, #tpu.memory_space<vmem>>, vector<1x128xf32>
    %cst_21 = arith.constant dense<0.000000e+00> : vector<1x128xf32>
    %69 = tpu.matmul %66, %7, %cst_21 {dimension_numbers = #tpu.dot_dimension_numbers<[1], [0], [0], [1], [0, 0, 1, 1], [], []>} : vector<1x32xf32>, vector<32x128xf32>, vector<1x128xf32> -> vector<1x128xf32>
    %70 = arith.addf %68, %69 : vector<1x128xf32>
    %71 = arith.negf %70 : vector<1x128xf32>
    %72 = math.exp %71 : vector<1x128xf32>
    %cst_22 = arith.constant 1.000000e+00 : f32
    %73 = vector.broadcast %cst_22 : f32 to vector<1x128xf32>
    %74 = arith.addf %73, %72 : vector<1x128xf32>
    %75 = arith.divf %73, %74 : vector<1x128xf32>
    %76 = vector.extract_strided_slice %75 {offsets = [0, 0], sizes = [1, 32], strides = [1, 1]} : vector<1x128xf32> to vector<1x32xf32>
    %77 = vector.extract_strided_slice %75 {offsets = [0, 32], sizes = [1, 32], strides = [1, 1]} : vector<1x128xf32> to vector<1x32xf32>
    %78 = vector.extract_strided_slice %75 {offsets = [0, 96], sizes = [1, 32], strides = [1, 1]} : vector<1x128xf32> to vector<1x32xf32>
    %79 = vector.extract_strided_slice %70 {offsets = [0, 64], sizes = [1, 32], strides = [1, 1]} : vector<1x128xf32> to vector<1x32xf32>
    %80 = math.tanh %79 : vector<1x32xf32>
    %81 = arith.mulf %77, %64 : vector<1x32xf32>
    %82 = arith.mulf %76, %80 : vector<1x32xf32>
    %83 = arith.addf %81, %82 : vector<1x32xf32>
    %84 = math.tanh %83 : vector<1x32xf32>
    %85 = arith.mulf %78, %84 : vector<1x32xf32>
    %c4_i32 = arith.constant 4 : i32
    %86 = arith.index_cast %c4_i32 : i32 to index
    %c0_23 = arith.constant 0 : index
    %87 = vector.load %arg8[%86, %c0_23] : memref<8x128xf32, #tpu.memory_space<vmem>>, vector<1x128xf32>
    %cst_24 = arith.constant dense<0.000000e+00> : vector<1x128xf32>
    %88 = tpu.matmul %85, %7, %cst_24 {dimension_numbers = #tpu.dot_dimension_numbers<[1], [0], [0], [1], [0, 0, 1, 1], [], []>} : vector<1x32xf32>, vector<32x128xf32>, vector<1x128xf32> -> vector<1x128xf32>
    %89 = arith.addf %87, %88 : vector<1x128xf32>
    %90 = arith.negf %89 : vector<1x128xf32>
    %91 = math.exp %90 : vector<1x128xf32>
    %cst_25 = arith.constant 1.000000e+00 : f32
    %92 = vector.broadcast %cst_25 : f32 to vector<1x128xf32>
    %93 = arith.addf %92, %91 : vector<1x128xf32>
    %94 = arith.divf %92, %93 : vector<1x128xf32>
    %95 = vector.extract_strided_slice %94 {offsets = [0, 0], sizes = [1, 32], strides = [1, 1]} : vector<1x128xf32> to vector<1x32xf32>
    %96 = vector.extract_strided_slice %94 {offsets = [0, 32], sizes = [1, 32], strides = [1, 1]} : vector<1x128xf32> to vector<1x32xf32>
    %97 = vector.extract_strided_slice %94 {offsets = [0, 96], sizes = [1, 32], strides = [1, 1]} : vector<1x128xf32> to vector<1x32xf32>
    %98 = vector.extract_strided_slice %89 {offsets = [0, 64], sizes = [1, 32], strides = [1, 1]} : vector<1x128xf32> to vector<1x32xf32>
    %99 = math.tanh %98 : vector<1x32xf32>
    %100 = arith.mulf %96, %83 : vector<1x32xf32>
    %101 = arith.mulf %95, %99 : vector<1x32xf32>
    %102 = arith.addf %100, %101 : vector<1x32xf32>
    %103 = math.tanh %102 : vector<1x32xf32>
    %104 = arith.mulf %97, %103 : vector<1x32xf32>
    %c5_i32 = arith.constant 5 : i32
    %105 = arith.index_cast %c5_i32 : i32 to index
    %c0_26 = arith.constant 0 : index
    %106 = vector.load %arg8[%105, %c0_26] : memref<8x128xf32, #tpu.memory_space<vmem>>, vector<1x128xf32>
    %cst_27 = arith.constant dense<0.000000e+00> : vector<1x128xf32>
    %107 = tpu.matmul %104, %7, %cst_27 {dimension_numbers = #tpu.dot_dimension_numbers<[1], [0], [0], [1], [0, 0, 1, 1], [], []>} : vector<1x32xf32>, vector<32x128xf32>, vector<1x128xf32> -> vector<1x128xf32>
    %108 = arith.addf %106, %107 : vector<1x128xf32>
    %109 = arith.negf %108 : vector<1x128xf32>
    %110 = math.exp %109 : vector<1x128xf32>
    %cst_28 = arith.constant 1.000000e+00 : f32
    %111 = vector.broadcast %cst_28 : f32 to vector<1x128xf32>
    %112 = arith.addf %111, %110 : vector<1x128xf32>
    %113 = arith.divf %111, %112 : vector<1x128xf32>
    %114 = vector.extract_strided_slice %113 {offsets = [0, 0], sizes = [1, 32], strides = [1, 1]} : vector<1x128xf32> to vector<1x32xf32>
    %115 = vector.extract_strided_slice %113 {offsets = [0, 32], sizes = [1, 32], strides = [1, 1]} : vector<1x128xf32> to vector<1x32xf32>
    %116 = vector.extract_strided_slice %113 {offsets = [0, 96], sizes = [1, 32], strides = [1, 1]} : vector<1x128xf32> to vector<1x32xf32>
    %117 = vector.extract_strided_slice %108 {offsets = [0, 64], sizes = [1, 32], strides = [1, 1]} : vector<1x128xf32> to vector<1x32xf32>
    %118 = math.tanh %117 : vector<1x32xf32>
    %119 = arith.mulf %115, %102 : vector<1x32xf32>
    %120 = arith.mulf %114, %118 : vector<1x32xf32>
    %121 = arith.addf %119, %120 : vector<1x32xf32>
    %122 = math.tanh %121 : vector<1x32xf32>
    %123 = arith.mulf %116, %122 : vector<1x32xf32>
    %c6_i32 = arith.constant 6 : i32
    %124 = arith.index_cast %c6_i32 : i32 to index
    %c0_29 = arith.constant 0 : index
    %125 = vector.load %arg8[%124, %c0_29] : memref<8x128xf32, #tpu.memory_space<vmem>>, vector<1x128xf32>
    %cst_30 = arith.constant dense<0.000000e+00> : vector<1x128xf32>
    %126 = tpu.matmul %123, %7, %cst_30 {dimension_numbers = #tpu.dot_dimension_numbers<[1], [0], [0], [1], [0, 0, 1, 1], [], []>} : vector<1x32xf32>, vector<32x128xf32>, vector<1x128xf32> -> vector<1x128xf32>
    %127 = arith.addf %125, %126 : vector<1x128xf32>
    %128 = arith.negf %127 : vector<1x128xf32>
    %129 = math.exp %128 : vector<1x128xf32>
    %cst_31 = arith.constant 1.000000e+00 : f32
    %130 = vector.broadcast %cst_31 : f32 to vector<1x128xf32>
    %131 = arith.addf %130, %129 : vector<1x128xf32>
    %132 = arith.divf %130, %131 : vector<1x128xf32>
    %133 = vector.extract_strided_slice %132 {offsets = [0, 0], sizes = [1, 32], strides = [1, 1]} : vector<1x128xf32> to vector<1x32xf32>
    %134 = vector.extract_strided_slice %132 {offsets = [0, 32], sizes = [1, 32], strides = [1, 1]} : vector<1x128xf32> to vector<1x32xf32>
    %135 = vector.extract_strided_slice %132 {offsets = [0, 96], sizes = [1, 32], strides = [1, 1]} : vector<1x128xf32> to vector<1x32xf32>
    %136 = vector.extract_strided_slice %127 {offsets = [0, 64], sizes = [1, 32], strides = [1, 1]} : vector<1x128xf32> to vector<1x32xf32>
    %137 = math.tanh %136 : vector<1x32xf32>
    %138 = arith.mulf %134, %121 : vector<1x32xf32>
    %139 = arith.mulf %133, %137 : vector<1x32xf32>
    %140 = arith.addf %138, %139 : vector<1x32xf32>
    %141 = math.tanh %140 : vector<1x32xf32>
    %142 = arith.mulf %135, %141 : vector<1x32xf32>
    %c7_i32 = arith.constant 7 : i32
    %143 = arith.index_cast %c7_i32 : i32 to index
    %c0_32 = arith.constant 0 : index
    %144 = vector.load %arg8[%143, %c0_32] : memref<8x128xf32, #tpu.memory_space<vmem>>, vector<1x128xf32>
    %cst_33 = arith.constant dense<0.000000e+00> : vector<1x128xf32>
    %145 = tpu.matmul %142, %7, %cst_33 {dimension_numbers = #tpu.dot_dimension_numbers<[1], [0], [0], [1], [0, 0, 1, 1], [], []>} : vector<1x32xf32>, vector<32x128xf32>, vector<1x128xf32> -> vector<1x128xf32>
    %146 = arith.addf %144, %145 : vector<1x128xf32>
    %147 = arith.negf %146 : vector<1x128xf32>
    %148 = math.exp %147 : vector<1x128xf32>
    %cst_34 = arith.constant 1.000000e+00 : f32
    %149 = vector.broadcast %cst_34 : f32 to vector<1x128xf32>
    %150 = arith.addf %149, %148 : vector<1x128xf32>
    %151 = arith.divf %149, %150 : vector<1x128xf32>
    %152 = vector.extract_strided_slice %151 {offsets = [0, 0], sizes = [1, 32], strides = [1, 1]} : vector<1x128xf32> to vector<1x32xf32>
    %153 = vector.extract_strided_slice %151 {offsets = [0, 32], sizes = [1, 32], strides = [1, 1]} : vector<1x128xf32> to vector<1x32xf32>
    %154 = vector.extract_strided_slice %151 {offsets = [0, 96], sizes = [1, 32], strides = [1, 1]} : vector<1x128xf32> to vector<1x32xf32>
    %155 = vector.extract_strided_slice %146 {offsets = [0, 64], sizes = [1, 32], strides = [1, 1]} : vector<1x128xf32> to vector<1x32xf32>
    %156 = math.tanh %155 : vector<1x32xf32>
    %157 = arith.mulf %153, %140 : vector<1x32xf32>
    %158 = arith.mulf %152, %156 : vector<1x32xf32>
    %159 = arith.addf %157, %158 : vector<1x32xf32>
    %160 = math.tanh %159 : vector<1x32xf32>
    %161 = arith.mulf %154, %160 : vector<1x32xf32>
    %c8_i32 = arith.constant 8 : i32
    %c0_35 = arith.constant 0 : index
    %c0_36 = arith.constant 0 : index
    %162 = vector.load %arg5[%c0_35, %c0_36] : memref<32x8xf32, #tpu.memory_space<vmem>>, vector<32x8xf32>
    %cst_37 = arith.constant dense<0.000000e+00> : vector<1x8xf32>
    %163 = tpu.matmul %161, %162, %cst_37 {dimension_numbers = #tpu.dot_dimension_numbers<[1], [0], [0], [1], [0, 0, 1, 1], [], []>} : vector<1x32xf32>, vector<32x8xf32>, vector<1x8xf32> -> vector<1x8xf32>
    %c0_38 = arith.constant 0 : index
    %c0_39 = arith.constant 0 : index
    %164 = vector.load %arg6[%c0_38, %c0_39] : memref<1x8xf32, #tpu.memory_space<vmem>>, vector<1x8xf32>
    %165 = arith.addf %163, %164 : vector<1x8xf32>
    %c0_40 = arith.constant 0 : index
    %c0_41 = arith.constant 0 : index
    %166 = vector.load %arg7[%c0_40, %c0_41] : memref<1x8xf32, #tpu.memory_space<vmem>>, vector<1x8xf32>
    tpu.vector_store %arg7[%c0_40, %c0_41], %165 {strides = array<i32>} : memref<1x8xf32, #tpu.memory_space<vmem>>, vector<1x8xf32>,
    return
  }
  func.func @transform_0(%arg0: i32) -> (i32, i32) {
    %c0_i32 = arith.constant 0 : i32
    %c0_i32_0 = arith.constant 0 : i32
    %c0_i32_1 = arith.constant 0 : i32
    return %c0_i32, %c0_i32_0 : i32, i32
  }
  func.func @transform_1(%arg0: i32) -> (i32, i32) {
    %c0_i32 = arith.constant 0 : i32
    %c0_i32_0 = arith.constant 0 : i32
    %c0_i32_1 = arith.constant 0 : i32
    return %c0_i32, %c0_i32_0 : i32, i32
  }
  func.func @transform_2(%arg0: i32) -> (i32, i32) {
    %c0_i32 = arith.constant 0 : i32
    %c0_i32_0 = arith.constant 0 : i32
    %c0_i32_1 = arith.constant 0 : i32
    return %c0_i32, %c0_i32_0 : i32, i32
  }
  func.func @transform_3(%arg0: i32) -> (i32, i32) {
    %c0_i32 = arith.constant 0 : i32
    %c0_i32_0 = arith.constant 0 : i32
    %c0_i32_1 = arith.constant 0 : i32
    return %c0_i32, %c0_i32_0 : i32, i32
  }
  func.func @transform_4(%arg0: i32) -> (i32, i32) {
    %c0_i32 = arith.constant 0 : i32
    %c0_i32_0 = arith.constant 0 : i32
    %c0_i32_1 = arith.constant 0 : i32
    return %c0_i32, %c0_i32_0 : i32, i32
  }
  func.func @transform_5(%arg0: i32) -> (i32, i32) {
    %c0_i32 = arith.constant 0 : i32
    %c0_i32_0 = arith.constant 0 : i32
    %c0_i32_1 = arith.constant 0 : i32
    return %c0_i32, %c0_i32_0 : i32, i32
  }
  func.func @transform_6(%arg0: i32) -> (i32, i32) {
    %c0_i32 = arith.constant 0 : i32
    %c0_i32_0 = arith.constant 0 : i32
    %c0_i32_1 = arith.constant 0 : i32
    return %c0_i32, %c0_i32_0 : i32, i32
  }
}

</mosaic_0001>

<bundles_post_ra>
// kernel: tpu_custom_call.1
= control target key start
LH: loop header
LB: loop body
LE: loop exit
PB: predicated region body
PF: predicated region fallthrough
CT: control target
= control target key end

     0   :  { %11 = vsyncpa [#allocation4], 0  ;;  %s1540_s0 = inlined_call_operand.vmem [shape: f32[8,16], index: 0, kind: input, shape index: {}]   ;;  %s1541_s1 = inlined_call_operand.hbm [shape: f32[16,128], index: 1, kind: input, shape index: {}]   ;;  %s1542_s2 = inlined_call_operand.vmem [shape: f32[32,128], index: 2, kind: input, shape index: {}]   ;;  %s1543_s3 = inlined_call_operand.vmem [shape: f32[1,128], index: 3, kind: input, shape index: {}]   ;;  %s1544_s4 = inlined_call_operand.vmem [shape: f32[32,8], index: 4, kind: input, shape index: {}]   ;;  %s1545_s5 = inlined_call_operand.vmem [shape: f32[1,8], index: 5, kind: input, shape index: {}]   ;;  %s1546_s6 = inlined_call_operand.hbm [shape: f32[1,8], index: 6, kind: output, shape index: {}]  }
   0x1   :  { %12 = vsyncpa [#allocation5], 0  ;;  %s1319_s21 = smov [#allocation3]  }
   0x2   :  { %s20_s22 = sshll.u32 %s1319_s21, 4  ;;  %s21_s22 = int_to_ptr.vmem [resolvable:$true] %s20_s22 }
   0x3   :  { %s1283_s23 = scalar_lea.vmem %s21_s22, 256  ;;  %p1288_p1 = scmp.lt.s32.totalorder %s21_s22, %s21_s22 }
   0x4   :  { %p1284_p0 = scmp.ne.s32.totalorder %s21_s22, %s1283_s23  ;;  %p1289_p2 = scmp.lt.s32.totalorder %s1283_s23, %s1283_s23 }
   0x6   :  { %p1290_p3 = por %p1289_p2, %p1288_p1 }
   0x8   :  { %p1291_p4 = pnand %p1290_p3, %p1284_p0 }
   0xa   :  { %1294 = shalt.err (!%p1291_p4)
}
   0xb   :  { %s1320_s24 = smov 128   ;;  %s1321_s25 = smov 8  }
   0xc   :  { %26 = dma.hbm_to_vmem [thread:$0]  %s1541_s1, 256, %s21_s22, [#allocation4], %s1320_s24, %s1320_s24, %s1321_s25  }
   0xd   :  { %1315 = dma.done.wait [#allocation4], 256  }
   0xe   :  { %1316 = vsyncadd [#allocation4], 4294967040  ;;  %v1322_v0 = vmov 0.0   ;;  %vm1323_vm0 = vmmov 0   ;;  %v40_v1 = vld [vmem:[#allocation3 + $0x8] sm:$0xff]  ;;  %v39_v2 = vld [vmem:[#allocation3] sm:$0xff] }
   0xf   :  { %1097 = vmatprep.subr.mxu0 %v1322_v0  ;;  %1101 = vmatprep.mubr.msk.f32.mxu0 %vm1323_vm0, %v1322_v0  ;;  %v38_v3 = vld [vmem:[%s1540_s0] sm:$0xff]  ;;  %vm48_vm1 = vcmask 130048   ;;  %v1377_v4 = vld [vmem:[%s1542_s2 + $0x18] sm:$0xff]  ;;  %v1382_v5 = vld [vmem:[%s1542_s2 + $0x10] sm:$0xff]  ;;  %s1324_s13 = smov 64   ;;  %vm128_vm2 = vcmask 261120  }
  0x10   :  { %1104 = vmatprep.subr.mxu1 %v1322_v0  ;;  %1112 = vmatprep.mubr.msk.f32.mxu1 %vm1323_vm0, %v1322_v0  ;;  %v1390_v6 = vld [vmem:[%s1542_s2 + $0x8] sm:$0xff]  ;;  %v1397_v7 = vld [vmem:[%s1542_s2] sm:$0xff]  ;;  %s1326_s24 = smov [#allocation6]   ;;  %vm1014_vm3 = vcmask 57344  }
  0x11   :  { %1098 = vmatpush3.msra.mxu0 %v40_v1  ;;  %1105 = vmatpush3.msra.mxu1 %v1377_v4  ;;  %v1031_v8 = vld [vmem:[%s1543_s3] ss:$0 sm:$0xff]  ;;  %s1325_s3 = smov 32  }
  0x12   :  { %1099 = vmatprep.subr.mxu0 %v1322_v0  ;;  %1106 = vmatprep.subr.mxu1 %v1322_v0 }
  0x13   :  { %1100 = vmatpush3.msra.mxu0 %v39_v2  ;;  %1107 = vmatpush3.msra.mxu1 %v1382_v5 }
  0x14   :  { %1102 = vmatmul.mubr.msk.f32.vlgmr.msra.gmra.mxu0 %vm48_vm1, %v38_v3  ;;  %1108 = vmatprep.subr.mxu1 %v1322_v0 }
  0x15   :  { %1115 = vmatprep.subr.mxu0 %v1322_v0  ;;  %1109 = vmatpush3.msra.mxu1 %v1390_v6 }
  0x16   :  { %1116 = vmatpush3.msra.mxu0 %v1377_v4  ;;  %1110 = vmatprep.subr.mxu1 %v1322_v0 }
  0x17   :  { %1117 = vmatprep.subr.mxu0 %v1322_v0  ;;  %1111 = vmatpush3.msra.mxu1 %v1397_v7 }
  0x18   :  { %1118 = vmatpush3.msra.mxu0 %v1382_v5  ;;  %1113 = vmatmul.mubr.f32.vlgmr.msra.gmra.mxu1 %v1322_v0 }
  0x19   :  { %1119 = vmatprep.subr.mxu0 %v1322_v0  ;;  %1123 = vmatprep.mubr.msk.f32.mxu0 %vm1323_vm0, %v1322_v0 }
  0x1a   :  { %1120 = vmatpush3.msra.mxu0 %v1390_v6  ;;  %1126 = vmatprep.subr.mxu1 %v1322_v0 }
  0x1b   :  { %1121 = vmatprep.subr.mxu0 %v1322_v0  ;;  %1127 = vmatpush3.msra.mxu1 %v1377_v4 }
  0x1c   :  { %1122 = vmatpush3.msra.mxu0 %v1397_v7  ;;  %1128 = vmatprep.subr.mxu1 %v1322_v0 }
  0x1d   :  { %1134 = vmatprep.mubr.msk.f32.mxu1 %vm1323_vm0, %v1322_v0  ;;  %1129 = vmatpush3.msra.mxu1 %v1382_v5 }
  0x1e   :  { %1137 = vmatprep.subr.mxu0 %v1322_v0  ;;  %1130 = vmatprep.subr.mxu1 %v1322_v0 }
  0x1f   :  { %1131 = vmatpush3.msra.mxu1 %v1390_v6 }
  0x20   :  { %1132 = vmatprep.subr.mxu1 %v1322_v0 }
  0x21   :  { %1133 = vmatpush3.msra.mxu1 %v1397_v7 }
  0x22   :  { %1148 = vmatprep.subr.mxu1 %v1322_v0 }
  0xd4   :  { %v118_v9 = vpop.f32.mrf.mxu0 }
  0xd5   :  { %v119_v10 = vadd.f32 %v1031_v8, %v118_v9 }
  0xd6   :  { %v1103_v11 = vpop.f32.mrf.mxu0 }
  0xd7   :  { %122 = vst [vmem:[#allocation2] sm:$0xff] %v119_v10 }
  0xd8   :  { %v198_v12 = vpop.f32.mrf.mxu1 }
  0xda   :  { %v1114_v13 = vpop.f32.mrf.mxu1 }
  0xde   :  { %v127_v14 = vld [vmem:[#allocation2] sm:$0x1]  ;;  %v227_v30 = vld [vmem:[#allocation2 + $0x1] sm:$0x1]  ;;  %v328_v48 = vld [vmem:[#allocation2 + $0x2] sm:$0x1] }
  0xdf   :  { %v202_v15 = vadd.f32 %v198_v12, %v127_v14  ;;  %v429_v3 = vld [vmem:[#allocation2 + $0x3] sm:$0x1] }
  0xe1   :  { %1211 = vtanh.f32 %v202_v15  ;;  %v1033_v17 = vmul.f32 -1.442695, %v202_v15 }
  0xe3   :  { %1213 = vpow2.f32 %v1033_v17 }
  0xee   :  { %v1212_v16 = vpop.eup %1211 }
  0xef   :  { %212 = vrot.lane.b32.xlu0 %v1212_v16, %s1324_s13 }
  0xf0   :  { %v1214_v18 = vpop.eup %1213 }
  0xf1   :  { %v206_v19 = vadd.f32 1.0, %v1214_v18 }
  0xf3   :  { %1215 = vrcp.f32 %v206_v19 }
 0x100   :  { %v1216_v20 = vpop.eup %1215 }
 0x101   :  { %v210_v23 = vmul.f32 0.0, %v1216_v20 }
 0x161   :  { %v213_v21 = vpop.permute.xlu0 %212 }
 0x162   :  { %v215_v22 = vmul.f32 %v1216_v20, %v213_v21 }
 0x164   :  { %217 = vrot.lane.b32.xlu0 %v215_v22, %s1325_s3 }
 0x1d6   :  { %v218_v24 = vpop.permute.xlu0 %217 }
 0x1d7   :  { %v220_v25 = vadd.f32 %v218_v24, %v210_v23 }
 0x1d9   :  { %1217 = vtanh.f32 %v220_v25 }
 0x1e6   :  { %v1218_v26 = vpop.eup %1217 }
 0x1e7   :  { %223 = vrot.lane.b32.xlu1 %v1218_v26, %s1324_s13 }
 0x259   :  { %v224_v27 = vpop.permute.xlu1 %223 }
 0x25a   :  { %v226_v28 = vmul.f32 %v1216_v20, %v224_v27 }
 0x25c   :  { %229 = vrot.lane.b32.xlu1 %v226_v28, %s1325_s3 }
 0x2ce   :  { %v230_v29 = vpop.permute.xlu1 %229 }
 0x2cf   :  { %1124 = vmatmul.mubr.msk.f32.vlgmr.msra.gmra.mxu0 %vm128_vm2, %v230_v29 }
 0x2d0   :  { %1138 = vmatpush3.msra.mxu0 %v1377_v4  ;;  %1145 = vmatprep.mubr.msk.f32.mxu0 %vm1323_vm0, %v1322_v0 }
 0x2d1   :  { %1139 = vmatprep.subr.mxu0 %v1322_v0 }
 0x2d2   :  { %1140 = vmatpush3.msra.mxu0 %v1382_v5 }
 0x2d3   :  { %1141 = vmatprep.subr.mxu0 %v1322_v0 }
 0x2d4   :  { %1142 = vmatpush3.msra.mxu0 %v1390_v6 }
 0x2d5   :  { %1143 = vmatprep.subr.mxu0 %v1322_v0 }
 0x2d6   :  { %1144 = vmatpush3.msra.mxu0 %v1397_v7 }
 0x2d7   :  { %1159 = vmatprep.subr.mxu0 %v1322_v0 }
 0x38f   :  { %v299_v31 = vpop.f32.mrf.mxu0 }
 0x390   :  { %v303_v32 = vadd.f32 %v299_v31, %v227_v30 }
 0x391   :  { %v1125_v33 = vpop.f32.mrf.mxu0 }
 0x392   :  { %1219 = vtanh.f32 %v303_v32  ;;  %v1035_v35 = vmul.f32 -1.442695, %v303_v32 }
 0x394   :  { %1221 = vpow2.f32 %v1035_v35 }
 0x39f   :  { %v1220_v34 = vpop.eup %1219 }
 0x3a0   :  { %313 = vrot.lane.b32.xlu0 %v1220_v34, %s1324_s13 }
 0x3a1   :  { %v1222_v36 = vpop.eup %1221 }
 0x3a2   :  { %v307_v37 = vadd.f32 1.0, %v1222_v36 }
 0x3a4   :  { %1223 = vrcp.f32 %v307_v37 }
 0x3b1   :  { %v1224_v38 = vpop.eup %1223 }
 0x3b2   :  { %v311_v41 = vmul.f32 %v1224_v38, %v220_v25  ;;  %v530_v25 = vld [vmem:[#allocation2 + $0x4] sm:$0x1] }
 0x412   :  { %v314_v39 = vpop.permute.xlu0 %313 }
 0x413   :  { %v316_v40 = vmul.f32 %v1224_v38, %v314_v39 }
 0x415   :  { %318 = vrot.lane.b32.xlu1 %v316_v40, %s1325_s3 }
 0x487   :  { %v319_v42 = vpop.permute.xlu1 %318 }
 0x488   :  { %v321_v43 = vadd.f32 %v319_v42, %v311_v41 }
 0x48a   :  { %1225 = vtanh.f32 %v321_v43 }
 0x497   :  { %v1226_v44 = vpop.eup %1225 }
 0x498   :  { %324 = vrot.lane.b32.xlu0 %v1226_v44, %s1324_s13 }
 0x50a   :  { %v325_v45 = vpop.permute.xlu0 %324 }
 0x50b   :  { %v327_v46 = vmul.f32 %v1224_v38, %v325_v45 }
 0x50d   :  { %330 = vrot.lane.b32.xlu1 %v327_v46, %s1325_s3 }
 0x57f   :  { %v331_v47 = vpop.permute.xlu1 %330 }
 0x580   :  { %1135 = vmatmul.mubr.msk.f32.vlgmr.msra.gmra.mxu1 %vm128_vm2, %v331_v47 }
 0x581   :  { %1149 = vmatpush3.msra.mxu1 %v1377_v4  ;;  %1156 = vmatprep.mubr.msk.f32.mxu1 %vm1323_vm0, %v1322_v0 }
 0x582   :  { %1150 = vmatprep.subr.mxu1 %v1322_v0 }
 0x583   :  { %1151 = vmatpush3.msra.mxu1 %v1382_v5 }
 0x584   :  { %1152 = vmatprep.subr.mxu1 %v1322_v0 }
 0x585   :  { %1153 = vmatpush3.msra.mxu1 %v1390_v6 }
 0x586   :  { %1154 = vmatprep.subr.mxu1 %v1322_v0 }
 0x587   :  { %1155 = vmatpush3.msra.mxu1 %v1397_v7 }
 0x588   :  { %1170 = vmatprep.subr.mxu1 %v1322_v0 }
 0x640   :  { %v400_v49 = vpop.f32.mrf.mxu1 }
 0x641   :  { %v404_v50 = vadd.f32 %v400_v49, %v328_v48 }
 0x642   :  { %v1136_v51 = vpop.f32.mrf.mxu1 }
 0x643   :  { %1227 = vtanh.f32 %v404_v50  ;;  %v1037_v53 = vmul.f32 -1.442695, %v404_v50 }
 0x645   :  { %1229 = vpow2.f32 %v1037_v53 }
 0x650   :  { %v1228_v52 = vpop.eup %1227 }
 0x651   :  { %414 = vrot.lane.b32.xlu0 %v1228_v52, %s1324_s13 }
 0x652   :  { %v1230_v54 = vpop.eup %1229 }
 0x653   :  { %v408_v55 = vadd.f32 1.0, %v1230_v54 }
 0x655   :  { %1231 = vrcp.f32 %v408_v55 }
 0x662   :  { %v1232_v56 = vpop.eup %1231 }
 0x663   :  { %v412_v59 = vmul.f32 %v1232_v56, %v321_v43  ;;  %v631_v43 = vld [vmem:[#allocation2 + $0x5] sm:$0x1] }
 0x6c3   :  { %v415_v57 = vpop.permute.xlu0 %414 }
 0x6c4   :  { %v417_v58 = vmul.f32 %v1232_v56, %v415_v57  ;;  %v732_v57 = vld [vmem:[#allocation2 + $0x6] sm:$0x1] }
 0x6c6   :  { %419 = vrot.lane.b32.xlu1 %v417_v58, %s1325_s3 }
 0x738   :  { %v420_v60 = vpop.permute.xlu1 %419 }
 0x739   :  { %v422_v61 = vadd.f32 %v420_v60, %v412_v59 }
 0x73b   :  { %1233 = vtanh.f32 %v422_v61 }
 0x748   :  { %v1234_v62 = vpop.eup %1233 }
 0x749   :  { %425 = vrot.lane.b32.xlu0 %v1234_v62, %s1324_s13 }
 0x7bb   :  { %v426_v63 = vpop.permute.xlu0 %425 }
 0x7bc   :  { %v428_v1 = vmul.f32 %v1232_v56, %v426_v63 }
 0x7be   :  { %431 = vrot.lane.b32.xlu1 %v428_v1, %s1325_s3 }
 0x830   :  { %v432_v2 = vpop.permute.xlu1 %431 }
 0x831   :  { %1146 = vmatmul.mubr.msk.f32.vlgmr.msra.gmra.mxu0 %vm128_vm2, %v432_v2 }
 0x832   :  { %1160 = vmatpush3.msra.mxu0 %v1377_v4  ;;  %1167 = vmatprep.mubr.msk.f32.mxu0 %vm1323_vm0, %v1322_v0 }
 0x833   :  { %1161 = vmatprep.subr.mxu0 %v1322_v0 }
 0x834   :  { %1162 = vmatpush3.msra.mxu0 %v1382_v5 }
 0x835   :  { %1163 = vmatprep.subr.mxu0 %v1322_v0 }
 0x836   :  { %1164 = vmatpush3.msra.mxu0 %v1390_v6 }
 0x837   :  { %1165 = vmatprep.subr.mxu0 %v1322_v0 }
 0x838   :  { %1166 = vmatpush3.msra.mxu0 %v1397_v7 }
 0x839   :  { %1181 = vmatprep.subr.mxu0 %v1322_v0 }
 0x8f1   :  { %v501_v8 = vpop.f32.mrf.mxu0 }
 0x8f2   :  { %v505_v9 = vadd.f32 %v501_v8, %v429_v3 }
 0x8f3   :  { %v1147_v10 = vpop.f32.mrf.mxu0 }
 0x8f4   :  { %1235 = vtanh.f32 %v505_v9  ;;  %v1039_v12 = vmul.f32 -1.442695, %v505_v9 }
 0x8f6   :  { %1237 = vpow2.f32 %v1039_v12 }
 0x901   :  { %v1236_v11 = vpop.eup %1235 }
 0x902   :  { %515 = vrot.lane.b32.xlu0 %v1236_v11, %s1324_s13 }
 0x903   :  { %v1238_v13 = vpop.eup %1237 }
 0x904   :  { %v509_v14 = vadd.f32 1.0, %v1238_v13 }
 0x906   :  { %1239 = vrcp.f32 %v509_v14 }
 0x913   :  { %v1240_v15 = vpop.eup %1239 }
 0x914   :  { %v513_v18 = vmul.f32 %v1240_v15, %v422_v61 }
 0x974   :  { %v516_v16 = vpop.permute.xlu0 %515 }
 0x975   :  { %v518_v17 = vmul.f32 %v1240_v15, %v516_v16  ;;  %v833_v16 = vld [vmem:[#allocation2 + $0x7] sm:$0x1] }
 0x977   :  { %520 = vrot.lane.b32.xlu1 %v518_v17, %s1325_s3 }
 0x9e9   :  { %v521_v19 = vpop.permute.xlu1 %520 }
 0x9ea   :  { %v523_v20 = vadd.f32 %v521_v19, %v513_v18 }
 0x9ec   :  { %1241 = vtanh.f32 %v523_v20 }
 0x9f9   :  { %v1242_v21 = vpop.eup %1241 }
 0x9fa   :  { %526 = vrot.lane.b32.xlu0 %v1242_v21, %s1324_s13 }
 0xa6c   :  { %v527_v22 = vpop.permute.xlu0 %526 }
 0xa6d   :  { %v529_v23 = vmul.f32 %v1240_v15, %v527_v22 }
 0xa6f   :  { %532 = vrot.lane.b32.xlu1 %v529_v23, %s1325_s3 }
 0xae1   :  { %v533_v24 = vpop.permute.xlu1 %532 }
 0xae2   :  { %1157 = vmatmul.mubr.msk.f32.vlgmr.msra.gmra.mxu1 %vm128_vm2, %v533_v24 }
 0xae3   :  { %1171 = vmatpush3.msra.mxu1 %v1377_v4  ;;  %1178 = vmatprep.mubr.msk.f32.mxu1 %vm1323_vm0, %v1322_v0 }
 0xae4   :  { %1172 = vmatprep.subr.mxu1 %v1322_v0 }
 0xae5   :  { %1173 = vmatpush3.msra.mxu1 %v1382_v5 }
 0xae6   :  { %1174 = vmatprep.subr.mxu1 %v1322_v0 }
 0xae7   :  { %1175 = vmatpush3.msra.mxu1 %v1390_v6 }
 0xae8   :  { %1176 = vmatprep.subr.mxu1 %v1322_v0 }
 0xae9   :  { %1177 = vmatpush3.msra.mxu1 %v1397_v7 }
 0xaea   :  { %1192 = vmatprep.subr.mxu1 %v1322_v0 }
 0xba2   :  { %v602_v26 = vpop.f32.mrf.mxu1 }
 0xba3   :  { %v606_v27 = vadd.f32 %v602_v26, %v530_v25 }
 0xba4   :  { %v1158_v28 = vpop.f32.mrf.mxu1 }
 0xba5   :  { %1243 = vtanh.f32 %v606_v27  ;;  %v1041_v30 = vmul.f32 -1.442695, %v606_v27 }
 0xba7   :  { %1245 = vpow2.f32 %v1041_v30  ;;  %v937_v30 = vld [vmem:[%s1544_s4 + $0x18] sm:$0xff] }
 0xbb2   :  { %v1244_v29 = vpop.eup %1243 }
 0xbb3   :  { %616 = vrot.lane.b32.xlu0 %v1244_v29, %s1324_s13 }
 0xbb4   :  { %v1246_v31 = vpop.eup %1245 }
 0xbb5   :  { %v610_v32 = vadd.f32 1.0, %v1246_v31  ;;  %v936_v31 = vld [vmem:[%s1544_s4 + $0x10] sm:$0xff] }
 0xbb7   :  { %1247 = vrcp.f32 %v610_v32  ;;  %v935_v32 = vld [vmem:[%s1544_s4 + $0x8] sm:$0xff] }
 0xbc4   :  { %v1248_v33 = vpop.eup %1247 }
 0xbc5   :  { %v614_v36 = vmul.f32 %v1248_v33, %v523_v20 }
 0xc25   :  { %v617_v34 = vpop.permute.xlu0 %616 }
 0xc26   :  { %v619_v35 = vmul.f32 %v1248_v33, %v617_v34 }
 0xc28   :  { %621 = vrot.lane.b32.xlu1 %v619_v35, %s1325_s3 }
 0xc9a   :  { %v622_v37 = vpop.permute.xlu1 %621 }
 0xc9b   :  { %v624_v38 = vadd.f32 %v622_v37, %v614_v36 }
 0xc9d   :  { %1249 = vtanh.f32 %v624_v38 }
 0xcaa   :  { %v1250_v39 = vpop.eup %1249 }
 0xcab   :  { %627 = vrot.lane.b32.xlu0 %v1250_v39, %s1324_s13 }
 0xd1d   :  { %v628_v40 = vpop.permute.xlu0 %627 }
 0xd1e   :  { %v630_v41 = vmul.f32 %v1248_v33, %v628_v40  ;;  %v934_v33 = vld [vmem:[%s1544_s4] sm:$0xff]  ;;  %s1022_s4 = sshll.u32 %s1326_s24, 4  ;;  %s1023_s4 = int_to_ptr.vmem [resolvable:$true] %s1022_s4 }
 0xd1f   :  { %s1295_s25 = scalar_lea.vmem %s1023_s4, 16  ;;  %s1299_s26 = scalar_lea.vmem %s1023_s4, 32 }
 0xd20   :  { %633 = vrot.lane.b32.xlu1 %v630_v41, %s1325_s3  ;;  %p1296_p5 = scmp.ne.s32.totalorder %s1023_s4, %s1295_s25  ;;  %p1300_p6 = scmp.lt.s32.totalorder %s1023_s4, %s1023_s4 }
 0xd21   :  { %p1301_p7 = scmp.lt.s32.totalorder %s1299_s26, %s1295_s25 }
 0xd23   :  { %p1302_p8 = por %p1301_p7, %p1300_p6 }
 0xd25   :  { %p1303_p9 = pnand %p1302_p8, %p1296_p5 }
 0xd92   :  { %v634_v42 = vpop.permute.xlu1 %633 }
 0xd93   :  { %1168 = vmatmul.mubr.msk.f32.vlgmr.msra.gmra.mxu0 %vm128_vm2, %v634_v42 }
 0xd94   :  { %1182 = vmatpush3.msra.mxu0 %v1377_v4  ;;  %1189 = vmatprep.mubr.msk.f32.mxu0 %vm1323_vm0, %v1322_v0 }
 0xd95   :  { %1183 = vmatprep.subr.mxu0 %v1322_v0 }
 0xd96   :  { %1184 = vmatpush3.msra.mxu0 %v1382_v5 }
 0xd97   :  { %1185 = vmatprep.subr.mxu0 %v1322_v0 }
 0xd98   :  { %1186 = vmatpush3.msra.mxu0 %v1390_v6 }
 0xd99   :  { %1187 = vmatprep.subr.mxu0 %v1322_v0 }
 0xd9a   :  { %1188 = vmatpush3.msra.mxu0 %v1397_v7 }
 0xe53   :  { %v703_v44 = vpop.f32.mrf.mxu0 }
 0xe54   :  { %v707_v45 = vadd.f32 %v703_v44, %v631_v43 }
 0xe55   :  { %v1169_v46 = vpop.f32.mrf.mxu0 }
 0xe56   :  { %1251 = vtanh.f32 %v707_v45  ;;  %v1043_v47 = vmul.f32 -1.442695, %v707_v45 }
 0xe58   :  { %1253 = vpow2.f32 %v1043_v47 }
 0xe63   :  { %v1252_v4 = vpop.eup %1251 }
 0xe64   :  { %717 = vrot.lane.b32.xlu0 %v1252_v4, %s1324_s13 }
 0xe65   :  { %v1254_v48 = vpop.eup %1253 }
 0xe66   :  { %v711_v5 = vadd.f32 1.0, %v1254_v48 }
 0xe68   :  { %1255 = vrcp.f32 %v711_v5 }
 0xe75   :  { %v1256_v49 = vpop.eup %1255 }
 0xe76   :  { %v715_v51 = vmul.f32 %v1256_v49, %v624_v38  ;;  %v938_v38 = vld [vmem:[%s1545_s5] sm:$0x1] }
 0xed6   :  { %v718_v50 = vpop.permute.xlu0 %717 }
 0xed7   :  { %v720_v6 = vmul.f32 %v1256_v49, %v718_v50 }
 0xed9   :  { %722 = vrot.lane.b32.xlu1 %v720_v6, %s1325_s3 }
 0xf4b   :  { %v723_v7 = vpop.permute.xlu1 %722 }
 0xf4c   :  { %v725_v52 = vadd.f32 %v723_v7, %v715_v51 }
 0xf4e   :  { %1257 = vtanh.f32 %v725_v52 }
 0xf5b   :  { %v1258_v53 = vpop.eup %1257 }
 0xf5c   :  { %728 = vrot.lane.b32.xlu0 %v1258_v53, %s1324_s13 }
 0xfce   :  { %v729_v54 = vpop.permute.xlu0 %728 }
 0xfcf   :  { %v731_v55 = vmul.f32 %v1256_v49, %v729_v54 }
 0xfd1   :  { %734 = vrot.lane.b32.xlu1 %v731_v55, %s1325_s3 }
0x1043   :  { %v735_v56 = vpop.permute.xlu1 %734 }
0x1044   :  { %1179 = vmatmul.mubr.msk.f32.vlgmr.msra.gmra.mxu1 %vm128_vm2, %v735_v56 }
0x1045   :  { %1200 = vmatprep.mubr.msk.f32.mxu1 %vm1323_vm0, %v1322_v0  ;;  %1193 = vmatpush3.msra.mxu1 %v937_v30 }
0x1046   :  { %1194 = vmatprep.subr.mxu1 %v1322_v0 }
0x1047   :  { %1195 = vmatpush3.msra.mxu1 %v936_v31 }
0x1048   :  { %1196 = vmatprep.subr.mxu1 %v1322_v0 }
0x1049   :  { %1197 = vmatpush3.msra.mxu1 %v935_v32 }
0x104a   :  { %1198 = vmatprep.subr.mxu1 %v1322_v0 }
0x104b   :  { %1199 = vmatpush3.msra.mxu1 %v934_v33 }
0x1104   :  { %v804_v58 = vpop.f32.mrf.mxu1 }
0x1105   :  { %v808_v59 = vadd.f32 %v804_v58, %v732_v57 }
0x1106   :  { %v1180_v60 = vpop.f32.mrf.mxu1 }
0x1107   :  { %1259 = vtanh.f32 %v808_v59  ;;  %v1045_v62 = vmul.f32 -1.442695, %v808_v59 }
0x1109   :  { %1261 = vpow2.f32 %v1045_v62 }
0x1114   :  { %v1260_v61 = vpop.eup %1259 }
0x1115   :  { %818 = vrot.lane.b32.xlu0 %v1260_v61, %s1324_s13 }
0x1116   :  { %v1262_v63 = vpop.eup %1261 }
0x1117   :  { %v812_v1 = vadd.f32 1.0, %v1262_v63 }
0x1119   :  { %1263 = vrcp.f32 %v812_v1 }
0x1126   :  { %v1264_v2 = vpop.eup %1263 }
0x1127   :  { %v816_v9 = vmul.f32 %v1264_v2, %v725_v52 }
0x1187   :  { %v819_v3 = vpop.permute.xlu0 %818 }
0x1188   :  { %v821_v8 = vmul.f32 %v1264_v2, %v819_v3 }
0x118a   :  { %823 = vrot.lane.b32.xlu1 %v821_v8, %s1325_s3 }
0x11fc   :  { %v824_v10 = vpop.permute.xlu1 %823 }
0x11fd   :  { %v826_v11 = vadd.f32 %v824_v10, %v816_v9 }
0x11ff   :  { %1265 = vtanh.f32 %v826_v11 }
0x120c   :  { %v1266_v12 = vpop.eup %1265 }
0x120d   :  { %829 = vrot.lane.b32.xlu0 %v1266_v12, %s1324_s13 }
0x127f   :  { %v830_v13 = vpop.permute.xlu0 %829 }
0x1280   :  { %v832_v14 = vmul.f32 %v1264_v2, %v830_v13 }
0x1282   :  { %835 = vrot.lane.b32.xlu1 %v832_v14, %s1325_s3 }
0x12f4   :  { %v836_v15 = vpop.permute.xlu1 %835 }
0x12f5   :  { %1190 = vmatmul.mubr.msk.f32.vlgmr.msra.gmra.mxu0 %vm128_vm2, %v836_v15 }
0x13b5   :  { %v905_v17 = vpop.f32.mrf.mxu0 }
0x13b6   :  { %v909_v18 = vadd.f32 %v905_v17, %v833_v16 }
0x13b7   :  { %v1191_v19 = vpop.f32.mrf.mxu0 }
0x13b8   :  { %1267 = vtanh.f32 %v909_v18  ;;  %v1047_v21 = vmul.f32 -1.442695, %v909_v18 }
0x13ba   :  { %1269 = vpow2.f32 %v1047_v21 }
0x13c5   :  { %v1268_v20 = vpop.eup %1267 }
0x13c6   :  { %919 = vrot.lane.b32.xlu0 %v1268_v20, %s1324_s13 }
0x13c7   :  { %v1270_v22 = vpop.eup %1269 }
0x13c8   :  { %v913_v23 = vadd.f32 1.0, %v1270_v22 }
0x13ca   :  { %1271 = vrcp.f32 %v913_v23 }
0x13d7   :  { %v1272_v24 = vpop.eup %1271 }
0x13d8   :  { %v917_v27 = vmul.f32 %v1272_v24, %v826_v11 }
0x1438   :  { %v920_v25 = vpop.permute.xlu0 %919 }
0x1439   :  { %v922_v26 = vmul.f32 %v1272_v24, %v920_v25 }
0x143b   :  { %924 = vrot.lane.b32.xlu1 %v922_v26, %s1325_s3 }
0x14ad   :  { %v925_v28 = vpop.permute.xlu1 %924 }
0x14ae   :  { %v927_v29 = vadd.f32 %v925_v28, %v917_v27 }
0x14b0   :  { %1273 = vtanh.f32 %v927_v29 }
0x14bd   :  { %v1274_v34 = vpop.eup %1273 }
0x14be   :  { %930 = vrot.lane.b32.xlu0 %v1274_v34, %s1324_s13 }
0x1530   :  { %v931_v35 = vpop.permute.xlu0 %930 }
0x1531   :  { %v933_v36 = vmul.f32 %v1272_v24, %v931_v35 }
0x1533   :  { %940 = vrot.lane.b32.xlu1 %v933_v36, %s1325_s3 }
0x15a5   :  { %v941_v37 = vpop.permute.xlu1 %940 }
0x15a6   :  { %1201 = vmatmul.mubr.msk.f32.vlgmr.msra.gmra.mxu1 %vm128_vm2, %v941_v37 }
0x1666   :  { %v1010_v39 = vpop.f32.mrf.mxu1 }
0x1667   :  { %v1011_v0 = vadd.f32 %v1010_v39, %v938_v38 }
0x1668   :  { %v1202_v40 = vpop.f32.mrf.mxu1 }
0x1669   :  { %1015 = vst.msk [vmem:[#allocation6] sm:$0x1] %vm1014_vm3, %v1011_v0 }
0x166a   :  { %1306 = shalt.err (!%p1303_p9)
}
0x166b   :  { %1025 = dma.vmem_to_hbm [thread:$0]  %s1023_s4, 16, %s1546_s6, [#allocation5]  }
0x166c   :  { %1317 = dma.done.wait [#allocation5], 16  }
0x166d   :  { %1318 = vsyncadd [#allocation5], 4294967280 }
0x166e   :  { %1029 = vsyncpa [#allocation4], 1 }
0x166f   :  { %1030 = vsyncpa [#allocation5], 1 }

</bundles_post_ra>
